<compile_context>
chip_gen: v6e
topology: v6e:2x2x1
jax: 0.10.0
libtpu: 0.0.40
codegen_flags: <defaults>
</compile_context>

<pallas_src>
import jax
import jax.numpy as jnp
from jax.experimental import pallas as pl
from jax.experimental.pallas import tpu as pltpu


def _round_up(x, m):
    return (x + m - 1) // m * m


def gcn_kernel(a_ref, graph_ref, seq_ref, w_ref, bias_ref, out_ref, fts_ref):
    # a_ref:     SMEM (1,)           f32   PReLU slope
    # graph_ref: VMEM (1, TM, Np)    bf16  row tile of the adjacency matrix
    # seq_ref:   VMEM (1, Np, Fi)    bf16  full (padded) feature block
    # w_ref:     VMEM (Fi, Fo)       bf16  Linear weight (pre-transposed)
    # bias_ref:  VMEM (1, Fo)        f32
    # out_ref:   VMEM (1, TM, Fo)    f32
    # fts_ref:   VMEM (Np, Fo)       bf16  scratch: seq @ W, persists over row tiles

    # Compute seq_fts once per batch.  The row-tile axis is the inner,
    # sequential ("arbitrary") grid axis, so program_id(1) == 0 marks the
    # first row tile of a new batch on this core.
    @pl.when(pl.program_id(1) == 0)
    def _():
        fts = jnp.dot(seq_ref[0], w_ref[...],
                      preferred_element_type=jnp.float32)
        fts_ref[...] = fts.astype(fts_ref.dtype)

    out = jnp.dot(graph_ref[0], fts_ref[...],
                  preferred_element_type=jnp.float32)
    out = out + bias_ref[...]                 # broadcast (1, Fo) over rows
    a = a_ref[0]                              # single-parameter PReLU slope
    out_ref[0] = jnp.where(out >= 0.0, out, a * out).astype(out_ref.dtype)


def gcn_forward(graph, seq, weight, bias, prelu_a):
    """graph: (B, N, N) f32, seq: (B, N, F_in) f32,
       weight: (F_in, F_out) f32 (already transposed vs nn.Linear),
       bias: (F_out,) f32, prelu_a: scalar f32.  Returns (B, N, F_out) f32."""
    B, N, F_in = seq.shape
    F_out = weight.shape[1]

    LANE = 128
    Np = _round_up(N, LANE)
    Fi = _round_up(F_in, LANE)
    Fo = _round_up(F_out, LANE)

    # Zero-pad to lane-dense shapes.  Padded graph cols / seq rows / weight
    # rows contribute 0; padded bias is 0 and PReLU(0) == 0, so padded output
    # rows/cols stay 0 and are sliced off below.
    graph_p = jnp.zeros((B, Np, Np), jnp.bfloat16)
    graph_p = graph_p.at[:, :N, :N].set(graph.astype(jnp.bfloat16))
    seq_p = jnp.zeros((B, Np, Fi), jnp.bfloat16)
    seq_p = seq_p.at[:, :N, :F_in].set(seq.astype(jnp.bfloat16))
    w_p = jnp.zeros((Fi, Fo), jnp.bfloat16)
    w_p = w_p.at[:F_in, :F_out].set(weight.astype(jnp.bfloat16))
    bias_p = jnp.zeros((1, Fo), jnp.float32)
    bias_p = bias_p.at[0, :F_out].set(bias.astype(jnp.float32))
    a_arr = jnp.asarray(prelu_a, jnp.float32).reshape(1)

    # Per-step VMEM footprint (inputs/outputs double-buffered + scratch).
    def footprint(tm):
        graph_tile = 2 * tm * Np * 2      # bf16
        seq_tile = 2 * Np * Fi * 2        # bf16
        w_tile = 2 * Fi * Fo * 2          # bf16
        bias_tile = 2 * Fo * 4            # f32
        out_tile = 2 * tm * Fo * 4        # f32
        scratch = Np * Fo * 2             # bf16 seq_fts
        return graph_tile + seq_tile + w_tile + bias_tile + out_tile + scratch

    # Largest row tile TM (multiple of 8, dividing Np) under a conservative
    # budget that is safe on v7x's 64 MiB physical VMEM.
    VMEM_BUDGET = 40 * 1024 * 1024
    tm = 8
    for cand in range(Np, 7, -8):
        if Np % cand == 0 and footprint(cand) <= VMEM_BUDGET:
            tm = cand
            break

    vmem_limit = max(16 * 1024 * 1024,
                     min(footprint(tm) + 8 * 1024 * 1024, 48 * 1024 * 1024))

    flops = 2.0 * B * Np * Np * Fo + 2.0 * B * Np * Fi * Fo
    bytes_accessed = (graph_p.size * 2 + seq_p.size * 2 + w_p.size * 2
                      + bias_p.size * 4 + B * Np * Fo * 4)
    cost = pl.CostEstimate(flops=int(flops), transcendentals=0,
                           bytes_accessed=int(bytes_accessed))

    out_p = pl.pallas_call(
        gcn_kernel,
        out_shape=jax.ShapeDtypeStruct((B, Np, Fo), jnp.float32),
        grid_spec=pltpu.PrefetchScalarGridSpec(
            num_scalar_prefetch=0,
            grid=(B, Np // tm),
            in_specs=[
                pl.BlockSpec(memory_space=pltpu.MemorySpace.SMEM),     # PReLU a
                pl.BlockSpec((1, tm, Np), lambda b, j: (b, j, 0)),     # graph row tile
                pl.BlockSpec((1, Np, Fi), lambda b, j: (b, 0, 0)),     # seq (full per batch)
                pl.BlockSpec((Fi, Fo), lambda b, j: (0, 0)),           # weight
                pl.BlockSpec((1, Fo), lambda b, j: (0, 0)),            # bias
            ],
            out_specs=pl.BlockSpec((1, tm, Fo), lambda b, j: (b, j, 0)),
            scratch_shapes=[pltpu.VMEM((Np, Fo), jnp.bfloat16)],
        ),
        compiler_params=pltpu.CompilerParams(
            # Batch axis shards across TensorCores; row-tile axis must stay
            # sequential because seq_fts is carried in a persistent scratch
            # initialized at program_id(1) == 0.
            dimension_semantics=("parallel", "arbitrary"),
            vmem_limit_bytes=int(vmem_limit),
        ),
        cost_estimate=cost,
    )(a_arr, graph_p, seq_p, w_p, bias_p)

    return out_p[:, :N, :F_out]


if __name__ == "__main__":
    # Small shapes consistent with the module's dense, batched forward.
    B, N, F_in, F_out = 2, 256, 32, 64

    key = jax.random.PRNGKey(0)
    k_seq, k_graph, k_w = jax.random.split(key, 3)

    seq = jax.random.normal(k_seq, (B, N, F_in), dtype=jnp.float32)
    # Row-normalized random adjacency-like matrix (dense "graph").
    adj = jax.random.uniform(k_graph, (B, N, N), dtype=jnp.float32)
    graph = adj / jnp.sum(adj, axis=-1, keepdims=True)

    # nn.Linear xavier_uniform_ on a (out_ft, in_ft) weight; stored transposed.
    bound = jnp.sqrt(6.0 / (F_in + F_out))
    w_t = jax.random.uniform(k_w, (F_out, F_in), dtype=jnp.float32,
                             minval=-bound, maxval=bound)
    weight = w_t.T                                   # (F_in, F_out)
    bias = jnp.zeros((F_out,), jnp.float32)          # bias.data.fill_(0.0)
    prelu_a = jnp.float32(0.25)                      # nn.PReLU() default

    out = gcn_forward(graph, seq, weight, bias, prelu_a)
    out = jax.block_until_ready(out)
    assert out.shape == (B, N, F_out)

    # Reference with the same bf16 input rounding the kernel uses (f32 accum).
    hp = jax.lax.Precision.HIGHEST
    g_bf = graph.astype(jnp.bfloat16).astype(jnp.float32)
    s_bf = seq.astype(jnp.bfloat16).astype(jnp.float32)
    w_bf = weight.astype(jnp.bfloat16).astype(jnp.float32)
    fts = jnp.einsum("bnf,fo->bno", s_bf, w_bf, precision=hp)
    fts = fts.astype(jnp.bfloat16).astype(jnp.float32)   # kernel's bf16 scratch
    ref = jnp.einsum("bij,bjf->bif", g_bf, fts, precision=hp) + bias
    ref = jnp.where(ref >= 0.0, ref, prelu_a * ref)
    assert jnp.allclose(out, ref, atol=2e-3, rtol=2e-3)

    # Looser sanity check against the pure-f32 semantics of the module.
    fts32 = jnp.einsum("bnf,fo->bno", seq, weight, precision=hp)
    ref32 = jnp.einsum("bij,bjf->bif", graph, fts32, precision=hp) + bias
    ref32 = jnp.where(ref32 >= 0.0, ref32, prelu_a * ref32)
    assert jnp.allclose(out, ref32, atol=5e-2, rtol=5e-2)

    # TODO(synk): sparse=True path (torch spmm on a sparse graph) is not
    # implemented; only the dense bmm/mm path is covered.
    print("KERNEL_OK")
</pallas_src>

<mosaic_0001>
module attributes {stable_mosaic.version = 11 : i64} {
  func.func @gcn_kernel(%arg0: i32, %arg1: i32, %arg2: memref<1xf32, #tpu.memory_space<smem>>, %arg3: memref<1x256x256xbf16, #tpu.memory_space<vmem>>, %arg4: memref<1x256x128xbf16, #tpu.memory_space<vmem>>, %arg5: memref<128x128xbf16, #tpu.memory_space<vmem>>, %arg6: memref<1x128xf32, #tpu.memory_space<vmem>>, %arg7: memref<1x256x128xf32, #tpu.memory_space<vmem>>, %arg8: memref<256x128xbf16, #tpu.memory_space<vmem>>) attributes {dimension_semantics = [#tpu.dimension_semantics<parallel>, #tpu.dimension_semantics<arbitrary>], iteration_bounds = array<i64: 2, 1>, scalar_prefetch = 0 : i64, scratch_operands = 1 : i64, tpu.core_type = #tpu.core_type<tc>, window_params = [{transform_indices = @transform_0, window_bounds = array<i64: 1>}, {transform_indices = @transform_1, window_bounds = array<i64: 1, 256, 256>}, {transform_indices = @transform_2, window_bounds = array<i64: 1, 256, 128>}, {pipeline_mode = #tpu.pipeline_mode<synchronous>, transform_indices = @transform_3, window_bounds = array<i64: 128, 128>}, {pipeline_mode = #tpu.pipeline_mode<synchronous>, transform_indices = @transform_4, window_bounds = array<i64: 1, 128>}, {transform_indices = @transform_5, window_bounds = array<i64: 1, 256, 128>}]} {
    %c0_i32 = arith.constant 0 : i32
    %0 = arith.cmpi eq, %arg1, %c0_i32 : i32
    %1 = arith.extui %0 : i1 to i32
    %c0_i32_0 = arith.constant 0 : i32
    %2 = arith.cmpi ne, %1, %c0_i32_0 : i32
    scf.if %2 {
      %c0_12 = arith.constant 0 : index
      %c0_13 = arith.constant 0 : index
      %c0_14 = arith.constant 0 : index
      %19 = vector.load %arg4[%c0_12, %c0_13, %c0_14] : memref<1x256x128xbf16, #tpu.memory_space<vmem>>, vector<1x256x128xbf16>
      %20 = vector.shape_cast %19 : vector<1x256x128xbf16> to vector<256x128xbf16>
      %c0_15 = arith.constant 0 : index
      %c0_16 = arith.constant 0 : index
      %21 = vector.load %arg5[%c0_15, %c0_16] : memref<128x128xbf16, #tpu.memory_space<vmem>>, vector<128x128xbf16>
      %cst_17 = arith.constant dense<0.000000e+00> : vector<256x128xf32>
      %22 = tpu.matmul %20, %21, %cst_17 {dimension_numbers = #tpu.dot_dimension_numbers<[1], [0], [0], [1], [0, 0, 1, 1], [], []>} : vector<256x128xbf16>, vector<128x128xbf16>, vector<256x128xf32> -> vector<256x128xf32>
      %23 = arith.truncf %22 : vector<256x128xf32> to vector<256x128xbf16>
      %c0_18 = arith.constant 0 : index
      %c0_19 = arith.constant 0 : index
      %24 = vector.load %arg8[%c0_18, %c0_19] : memref<256x128xbf16, #tpu.memory_space<vmem>>, vector<256x128xbf16>
      tpu.vector_store %arg8[%c0_18, %c0_19], %23 {strides = array<i32>} : memref<256x128xbf16, #tpu.memory_space<vmem>>, vector<256x128xbf16>,
    } else {
    }
    %c0 = arith.constant 0 : index
    %c0_1 = arith.constant 0 : index
    %c0_2 = arith.constant 0 : index
    %3 = vector.load %arg3[%c0, %c0_1, %c0_2] : memref<1x256x256xbf16, #tpu.memory_space<vmem>>, vector<1x256x256xbf16>
    %4 = vector.shape_cast %3 : vector<1x256x256xbf16> to vector<256x256xbf16>
    %c0_3 = arith.constant 0 : index
    %c0_4 = arith.constant 0 : index
    %5 = vector.load %arg8[%c0_3, %c0_4] : memref<256x128xbf16, #tpu.memory_space<vmem>>, vector<256x128xbf16>
    %cst = arith.constant dense<0.000000e+00> : vector<256x128xf32>
    %6 = tpu.matmul %4, %5, %cst {dimension_numbers = #tpu.dot_dimension_numbers<[1], [0], [0], [1], [0, 0, 1, 1], [], []>} : vector<256x256xbf16>, vector<256x128xbf16>, vector<256x128xf32> -> vector<256x128xf32>
    %c0_5 = arith.constant 0 : index
    %c0_6 = arith.constant 0 : index
    %7 = vector.load %arg6[%c0_5, %c0_6] : memref<1x128xf32, #tpu.memory_space<vmem>>, vector<1x128xf32>
    %8 = vector.broadcast %7 : vector<1x128xf32> to vector<256x128xf32>
    %9 = arith.addf %6, %8 : vector<256x128xf32>
    %c0_7 = arith.constant 0 : index
    %10 = memref.load %arg2[%c0_7] : memref<1xf32, #tpu.memory_space<smem>>
    %cst_8 = arith.constant 0.000000e+00 : f32
    %11 = vector.broadcast %cst_8 : f32 to vector<256x128xf32>
    %12 = arith.cmpf oge, %9, %11 : vector<256x128xf32>
    %13 = vector.broadcast %10 : f32 to vector<256x128xf32>
    %14 = arith.mulf %13, %9 : vector<256x128xf32>
    %15 = arith.select %12, %9, %14 : vector<256x128xi1>, vector<256x128xf32>
    %c0_9 = arith.constant 0 : index
    %c0_10 = arith.constant 0 : index
    %c0_11 = arith.constant 0 : index
    %16 = vector.load %arg7[%c0_9, %c0_10, %c0_11] : memref<1x256x128xf32, #tpu.memory_space<vmem>>, vector<1x256x128xf32>
    %17 = vector.shape_cast %16 : vector<1x256x128xf32> to vector<256x128xf32>
    %18 = vector.shape_cast %15 : vector<256x128xf32> to vector<1x256x128xf32>
    tpu.vector_store %arg7[%c0_9, %c0_10, %c0_11], %18 {strides = array<i32>} : memref<1x256x128xf32, #tpu.memory_space<vmem>>, vector<1x256x128xf32>,
    return
  }
  func.func @transform_0(%arg0: i32, %arg1: i32) -> i32 {
    %c0_i32 = arith.constant 0 : i32
    %c0_i32_0 = arith.constant 0 : i32
    return %c0_i32 : i32
  }
  func.func @transform_1(%arg0: i32, %arg1: i32) -> (i32, i32, i32) {
    %c0_i32 = arith.constant 0 : i32
    %c0_i32_0 = arith.constant 0 : i32
    return %arg0, %arg1, %c0_i32 : i32, i32, i32
  }
  func.func @transform_2(%arg0: i32, %arg1: i32) -> (i32, i32, i32) {
    %c0_i32 = arith.constant 0 : i32
    %c0_i32_0 = arith.constant 0 : i32
    %c0_i32_1 = arith.constant 0 : i32
    return %arg0, %c0_i32, %c0_i32_0 : i32, i32, i32
  }
  func.func @transform_3(%arg0: i32, %arg1: i32) -> (i32, i32) {
    %c0_i32 = arith.constant 0 : i32
    %c0_i32_0 = arith.constant 0 : i32
    %c0_i32_1 = arith.constant 0 : i32
    return %c0_i32, %c0_i32_0 : i32, i32
  }
  func.func @transform_4(%arg0: i32, %arg1: i32) -> (i32, i32) {
    %c0_i32 = arith.constant 0 : i32
    %c0_i32_0 = arith.constant 0 : i32
    %c0_i32_1 = arith.constant 0 : i32
    return %c0_i32, %c0_i32_0 : i32, i32
  }
  func.func @transform_5(%arg0: i32, %arg1: i32) -> (i32, i32, i32) {
    %c0_i32 = arith.constant 0 : i32
    %c0_i32_0 = arith.constant 0 : i32
    return %arg0, %arg1, %c0_i32 : i32, i32, i32
  }
}

</mosaic_0001>

<bundles_post_ra>
// kernel: tpu_custom_call.1
= control target key start
LH: loop header
LB: loop body
LE: loop exit
PB: predicated region body
PF: predicated region fallthrough
CT: control target
= control target key end

     0   :  { %s2802_s0 = inlined_call_operand.<no memory space> [shape: f32[1], index: 0, kind: input, shape index: {}]   ;;  %s2803_s1 = inlined_call_operand.hbm [shape: bf16[2,256,256], index: 1, kind: input, shape index: {}]   ;;  %s2804_s2 = inlined_call_operand.hbm [shape: bf16[2,256,128], index: 2, kind: input, shape index: {}]   ;;  %s2805_s3 = inlined_call_operand.hbm [shape: bf16[128,128], index: 3, kind: input, shape index: {}]   ;;  %s2806_s4 = inlined_call_operand.vmem [shape: f32[1,128], index: 4, kind: input, shape index: {}]   ;;  %s2807_s5 = inlined_call_operand.hbm [shape: f32[2,256,128], index: 5, kind: output, shape index: {}]  }
   0x1   :  { %2814 = sst [smem:[#allocation19_spill]] %s2803_s1 }
   0x2   :  { %2815 = sst [smem:[#allocation20_spill]] %s2805_s3 }
   0x3   :  { %10 = sst [smem:[#allocation3]] %s2802_s0 }
   0x4   :  { %11 = vsyncpa [#allocation5], 0 }
   0x5   :  { %13 = vsyncpa [#allocation5 + $0x1], 0 }
   0x6   :  { %14 = vsyncpa [#allocation8], 0 }
   0x7   :  { %16 = vsyncpa [#allocation8 + $0x1], 0 }
   0x8   :  { %17 = vsyncpa [#allocation6], 0 }
   0x9   :  { %19 = vsyncpa [#allocation6 + $0x1], 0  ;;  %s2433_s20 = smov 0   ;;  %s2435_s21 = smov 0  }
   0xa   :  { %s2437_s22 = smov 0   ;;  %s2439_s23 = smov 0  }
   0xb   :  { %s2441_s24 = smov 0   ;;  %s2443_s25 = smov 0  }
   0xc LB: > { %2816 = sst [smem:[#allocation15_spill]] %s2376_s22  ;;  %s2464_s0 = sadd.s32 4294967295, %s2388_s25   ;;  %s2388_s25 = sphi %s2443_s25, %s25_s25   ;;  %s2384_s24 = sphi %s2441_s24, %s2840_s24   ;;  %s2380_s23 = sphi %s2439_s23, %s2839_s23   ;;  %s2376_s22 = sphi %s2437_s22, %s2835_s22   ;;  %s2372_s21 = sphi %s2435_s21, %s2838_s21   ;;  %s2368_s20 = sphi %s2433_s20, %s2837_s20  }
   0xd   : > { %2817 = sst [smem:[#allocation16_spill]] %s2388_s25  ;;  %s1591_s26 = sadd.s32 4294967294, %s2388_s25  }
   0xe   : > { %p80_p0 = scmp.ne.s32.totalorder %s2372_s21, %s2368_s20  ;;  %p81_p1 = scmp.eq.s32.totalorder %s2464_s0, 0 }
   0xf   : > { %p180_p3 = scmp.eq.s32.totalorder %s1591_s26, 1  ;;  %p1592_p5 = scmp.ge.s32.totalorder %s2388_s25, 1 }
  0x10   : > { %p2473_p4 = por %p81_p1, %p80_p0  ;;  %p187_p7 = scmp.lt.s32.totalorder %s2388_s25, 3 }
  0x11   : > { %p2478_p6 = por %p180_p3, %p80_p0  ;;  %s2390_s30 = smov [#allocation9]  }
  0x12   : > { %p2483_p8 = pnand %p1592_p5, %p187_p7  ;;  %s202_s6 = sshll.u32 %s2390_s30, 4  ;;  %s203_s6 = int_to_ptr.vmem [resolvable:$true] %s202_s6 }
  0x13   : > { %s2819_s28 = scalar_select %p2478_p6, 1, 0 }
  0x14   : > { %p2056_p9 = pneg %p2483_p8  ;;  %p1594_p10 = scmp.ge.s32.totalorder %s2388_s25, 2 }
  0x15   : > { %s37_s8 = sadd.s32 1, %s2384_s24  ;;  %s2229_s9 = scalar_lea.vmem %s203_s6, 1024 }
  0x16   : > { %p2492_p11 = pnand %p2056_p9, %p81_p1  ;;  %p2230_p13 = scmp.ne.s32.totalorder %s203_s6, %s2229_s9 }
  0x17   : > { %p2237_p5 = scmp.lt.s32.totalorder %s203_s6, %s203_s6  ;;  %p2238_p7 = scmp.lt.s32.totalorder %s2229_s9, %s2229_s9 }
  0x18   : > { %p2220_p12 = pneg %p2492_p11 }
  0x19   : > { %p2239_p2 = por %p2238_p7, %p2237_p5 }
  0x1a   : > { %p2232_p0 = pnand %p2230_p13, %p2220_p12 }
  0x1c   : > { %p2233_p3 = pneg %p2232_p0 }
  0x1e   : > { %p2240_p6 = pnand %p2239_p2, %p2233_p3 }
  0x20   : > { %2243 = shalt.err (!%p2240_p6)
}
  0x21   : > { %s2808_s10 = smov 64   ;;  %s2809_s11 = smov 4  }
  0x22   : > { %s2822_s3 = sld [smem:[#allocation20_spill]]  ;;  %p39_p2 = scmp.ge.s32.totalorder %s37_s8, 2 }
  0x23   : > { %s67_s14 = sadd.s32 1, %s2376_s22  ;;  %p74_p6 = scmp.ne.s32.totalorder %s2376_s22, %s2372_s21 }
  0x24   : > { %p75_p9 = scmp.eq.s32.totalorder %s2388_s25, 0  ;;  %s2842_s8 = smov (%p39_p2, %s37_s8), 0 }
  0x25   : > { %2823 = sst [smem:[#allocation17_spill]] %s2842_s8  ;;  %p2825_p13 = scmp.eq.s32.totalorder %s2464_s0, 1 }
  0x26   : > { %p2513_p12 = por %p75_p9, %p74_p6  ;;  %s62_s17 = ssub.s32 %s2384_s24, %s2842_s8 }
  0x27   : > { %p2519_p0 = por %p2825_p13, %p74_p6  ;;  %p65_p3 = scmp.eq.s32.totalorder %s62_s17, 0 }
  0x28   : > { %2059 = dma.hbm_to_vmem [thread:$0]  (!%p2492_p11), %s2822_s3, 1024, %s203_s6, [#allocation8], %s2808_s10, %s2808_s10, %s2809_s11  }
  0x29   : > { %p2072_p11 = scmp.lt.s32.totalorder %s2388_s25, 2  ;;  %s2527_s18 = sand.u32 1, %s2376_s22  }
  0x2a   : > { %s1595_s19 = sshll.u32 %s2527_s18, 8  ;;  %s1716_s30 = sshll.u32 %s2384_s24, 12 }
  0x2b   : > { %s2531_s26 = scalar_select %p65_p3, %s2376_s22, %s67_s14  }
  0x2c   : > { %s2828_s1 = sld [smem:[#allocation19_spill]]  ;;  %s223_s12 = scalar_lea.vmem [#allocation4], %s1595_s19 }
  0x2d   : > { %2827 = sst [smem:[#allocation18_spill]] %s2531_s26  ;;  %s233_s13 = sshll.u32 %s223_s12, 4  ;;  %s234_s13 = int_to_ptr.vmem [resolvable:$true] %s233_s13 }
  0x2e   : > { %p2539_p5 = pnand %p2072_p11, %p2513_p12  ;;  %s243_s17 = sand.u32 1, %s2388_s25  }
  0x2f   : > { %s220_s11 = scalar_lea.sflag [#allocation5], %s2527_s18  ;;  %s2257_s14 = scalar_lea.vmem %s234_s13, 4096 }
  0x30   : > { %p2246_p7 = pneg %p2539_p5  ;;  %p2258_p2 = scmp.ne.s32.totalorder %s234_s13, %s2257_s14 }
  0x31   : > { %s2393_s19 = smov [#allocation4]  }
  0x32   : > { %s232_s9 = scalar_lea.hbm %s2828_s1, %s1716_s30  ;;  %p2260_p6 = pnand %p2258_p2, %p2246_p7 }
  0x33   : > { %s2262_s30 = sshll.u32 %s2393_s19, 4  ;;  %s2263_s30 = int_to_ptr.vmem [resolvable:$false] %s2262_s30 }
  0x34   : > { %p2261_p9 = pneg %p2260_p6  ;;  %s2264_s15 = scalar_lea.vmem %s2263_s30, 8192 }
  0x35   : > { %p2265_p12 = scmp.lt.s32.totalorder %s234_s13, %s2263_s30  ;;  %p2266_p13 = scmp.lt.s32.totalorder %s2264_s15, %s2257_s14 }
  0x37   : > { %p2267_p11 = por %p2266_p13, %p2265_p12 }
  0x39   : > { %p2268_p3 = pnand %p2267_p11, %p2261_p9 }
  0x3b   : > { %2271 = shalt.err (!%p2268_p3)
}
  0x3c   : > { %s2394_s6 = smov 128   ;;  %s2395_s7 = smov 8  }
  0x3d   : > { %2063 = dma.hbm_to_vmem [thread:$0]  (!%p2539_p5), %s232_s9, 4096, %s234_s13, %s220_s11, %s2394_s6, %s2394_s6, %s2395_s7  }
  0x3e   : > { %s1598_s12 = sshll.u32 %s2527_s18, 7  ;;  %s1717_s1 = sshll.u32 %s2384_s24, 11 }
  0x3f   : > { %s253_s19 = scalar_lea.hbm %s2804_s2, %s1717_s1  ;;  %s247_s26 = scalar_lea.vmem [#allocation7], %s1598_s12 }
  0x40   : > { %s254_s30 = sshll.u32 %s247_s26, 4  ;;  %s244_s14 = scalar_lea.sflag [#allocation8], %s243_s17  ;;  %s255_s30 = int_to_ptr.vmem [resolvable:$true] %s254_s30 }
  0x41   : > { %s2285_s15 = scalar_lea.vmem %s255_s30, 2048  ;;  %s2396_s22 = smov [#allocation7]  }
  0x42   : > { %p2286_p2 = scmp.ne.s32.totalorder %s255_s30, %s2285_s15  ;;  %s2290_s25 = sshll.u32 %s2396_s22, 4  ;;  %s2291_s25 = int_to_ptr.vmem [resolvable:$false] %s2290_s25 }
  0x43   : > { %s2292_s11 = scalar_lea.vmem %s2291_s25, 4096  ;;  %p2293_p12 = scmp.lt.s32.totalorder %s255_s30, %s2291_s25 }
  0x44   : > { %p2288_p6 = pnand %p2286_p2, %p2246_p7  ;;  %p2294_p13 = scmp.lt.s32.totalorder %s2292_s11, %s2285_s15 }
  0x46   : > { %p2289_p9 = pneg %p2288_p6  ;;  %p2295_p11 = por %p2294_p13, %p2293_p12 }
  0x48   : > { %p2296_p3 = pnand %p2295_p11, %p2289_p9 }
  0x4a   : > { %2299 = shalt.err (!%p2296_p3)
}
  0x4b   : > { %s2830_s1 = smov 4   ;;  %s2831_s3 = smov 64  }
  0x4c   : > { %2066 = dma.hbm_to_vmem [thread:$0]  (!%p2539_p5), %s253_s19, 2048, %s255_s30, %s244_s14, %s2831_s3, %s2831_s3, %s2830_s1  }
  0x4d   : > { %266 = sbr.rel (%p2483_p8) target bundleno = 724 (0x2d4), region = 40  ;;  %s2568_s8 = sand.u32 (!%p2483_p8), 1, %s2372_s21  }
  0x4e   : > { %s1602_s22 = sshll.u32 (!%p2483_p8), %s2568_s8, 8  ;;  %s269_s25 = scalar_lea.sflag (!%p2483_p8), [#allocation5], %s2568_s8 }
  0x4f   : > { %s2574_s18 = scalar_lea.vmem (!%p2483_p8), [#allocation4], %s1602_s22 }
  0x52   : > { %2351 = dma.done.wait (%p2473_p4), %s269_s25, 4096  }
  0x53   : > { %2353 = vsyncadd (%p2473_p4), %s269_s25, 4294963200  ;;  %s277_s29 = sand.u32 1, %s2464_s0   ;;  %s1603_s10 = sshll.u32 %s2568_s8, 7 }
  0x54   : > { %s278_s26 = scalar_lea.sflag [#allocation8], %s277_s29  ;;  %s2582_s9 = scalar_lea.vmem [#allocation7], %s1603_s10 }
  0x55   : > { %2355 = dma.done.wait (%p2473_p4), %s278_s26, 2048  }
  0x56   : > { %2357 = vsyncadd (%p2473_p4), %s278_s26, 4294965248 }
  0x57   : > { %2359 = dma.done.wait (%p81_p1), [#allocation8], 1024  }
  0x58   : > { %2361 = vsyncadd (%p81_p1), [#allocation8], 4294966272  ;;  %v2130_v0 = vld [vmem:[#allocation9 + $0x38] sm:$0xff]   ;;  %v2131_v1 = vld [vmem:[#allocation9 + $0x30] sm:$0xff]   ;;  %s1325_s0 = sld [smem:[#allocation3]]  ;;  %s2654_s17 = scalar_lea.vmem [#allocation10], %s1602_s22 }
  0x59   : > { %1982 = vmatprep.subr.bf16.mxu0 %v2130_v0  ;;  %v2132_v2 = vld [vmem:[#allocation9 + $0x28] sm:$0xff]   ;;  %v2133_v3 = vld [vmem:[#allocation9 + $0x20] sm:$0xff]   ;;  %v2134_v5 = vld [vmem:[#allocation9 + $0x18] sm:$0xff]   ;;  %s1750_s6 = sshll.u32 %s2380_s23, 12  ;;  %s1471_s7 = sshll.u32 %s2654_s17, 4  ;;  %s2753_s7 = int_to_ptr.vmem [resolvable:$true] %s1471_s7 }
  0x5a   : > { %1983 = vmatpush3.bf16.msra.mxu0 %v2130_v0  ;;  %v2138_v4 = vld [vmem:[%s2582_s9] sm:$0xff]   ;;  %v2135_v6 = vld [vmem:[#allocation9 + $0x10] sm:$0xff]   ;;  %v2136_v7 = vld [vmem:[#allocation9 + $0x8] sm:$0xff]   ;;  %s2751_s30 = scalar_lea.hbm %s2807_s5, %s1750_s6  ;;  %s1456_s23 = scalar_lea.sflag [#allocation6], %s2568_s8 }
  0x5b   : > { %1984 = vmatprep.subr.bf16.mxu0 %v2131_v1  ;;  %1998 = vmatprep.mubr.bf16.mxu0 %v2138_v4  ;;  %v2137_v8 = vld [vmem:[#allocation9] sm:$0xff]   ;;  %v2139_v9 = vld [vmem:[%s2582_s9 + $0x8] sm:$0xff]   ;;  %v2140_v10 = vld [vmem:[%s2582_s9 + $0x10] sm:$0xff]   ;;  %s2300_s14 = scalar_lea.vmem %s2753_s7, 4096  ;;  %s2397_s15 = smov [#allocation10]  }
  0x5c   : > { %v2141_v11 = vld [vmem:[%s2582_s9 + $0x18] sm:$0xff]   ;;  %v2142_v12 = vld [vmem:[%s2582_s9 + $0x20] sm:$0xff]   ;;  %v2143_v13 = vld [vmem:[%s2582_s9 + $0x28] sm:$0xff]   ;;  %p2301_p1 = scmp.ne.s32.totalorder %s2753_s7, %s2300_s14  ;;  %s2304_s11 = sshll.u32 %s2397_s15, 4  ;;  %s2305_s11 = int_to_ptr.vmem [resolvable:$false] %s2304_s11 }
  0x5d   : > { %v2144_v14 = vld [vmem:[%s2582_s9 + $0x30] sm:$0xff]   ;;  %v2145_v15 = vld [vmem:[%s2582_s9 + $0x38] sm:$0xff]   ;;  %v2146_v16 = vld [vmem:[%s2582_s9 + $0x40] sm:$0xff]   ;;  %s2306_s1 = scalar_lea.vmem %s2305_s11, 8192  ;;  %p2307_p5 = scmp.lt.s32.totalorder %s2753_s7, %s2305_s11 }
  0x5e   : > { %1985 = vmatpush3.bf16.msra.mxu0 %v2131_v1  ;;  %v2147_v17 = vld [vmem:[%s2582_s9 + $0x48] sm:$0xff]   ;;  %v2148_v18 = vld [vmem:[%s2582_s9 + $0x50] sm:$0xff]   ;;  %v2149_v19 = vld [vmem:[%s2582_s9 + $0x58] sm:$0xff]   ;;  %p2302_p4 = pnand %p2301_p1, %p2519_p0  ;;  %p2308_p7 = scmp.lt.s32.totalorder %s2306_s1, %s2300_s14 }
  0x5f   : > { %1986 = vmatprep.subr.bf16.mxu0 %v2132_v2  ;;  %v2150_v20 = vld [vmem:[%s2582_s9 + $0x60] sm:$0xff]   ;;  %v2151_v21 = vld [vmem:[%s2582_s9 + $0x68] sm:$0xff]   ;;  %v2152_v22 = vld [vmem:[%s2582_s9 + $0x70] sm:$0xff]  }
  0x60   : > { %v2153_v23 = vld [vmem:[%s2582_s9 + $0x78] sm:$0xff]   ;;  %v2172_v24 = vld [vmem:[%s2574_s18 + $0x44] ss:$8 sps:$4 sm:$0xff]   ;;  %p2303_p8 = pneg %p2302_p4  ;;  %p2309_p2 = por %p2308_p7, %p2307_p5 }
  0x61   : > { %1228 = vmatprep.mubr.bf16.mxu1 %v2172_v24  ;;  %v2193_v44 = vld [vmem:[%s2574_s18 + $0x4] ss:$8 sps:$4 sm:$0xff]  }
  0x62   : > { %1987 = vmatpush3.bf16.msra.mxu0 %v2132_v2  ;;  %p2310_p6 = pnand %p2309_p2, %p2303_p8 }
  0x63   : > { %1988 = vmatprep.subr.bf16.mxu0 %v2133_v3 }
  0x66   : > { %1989 = vmatpush3.bf16.msra.mxu0 %v2133_v3 }
  0x67   : > { %1990 = vmatprep.subr.bf16.mxu0 %v2134_v5 }
  0x6a   : > { %1991 = vmatpush3.bf16.msra.mxu0 %v2134_v5 }
  0x6b   : > { %1992 = vmatprep.subr.bf16.mxu0 %v2135_v6 }
  0x6e   : > { %1993 = vmatpush3.bf16.msra.mxu0 %v2135_v6 }
  0x6f   : > { %1994 = vmatprep.subr.bf16.mxu0 %v2136_v7 }
  0x72   : > { %1995 = vmatpush3.bf16.msra.mxu0 %v2136_v7 }
  0x73   : > { %1996 = vmatprep.subr.bf16.mxu0 %v2137_v8 }
  0x76   : > { %1997 = vmatpush3.bf16.msra.mxu0 %v2137_v8 }
  0x79   : > { %1999 = vmatmul.mubr.bf16.vlgmr.msra.gmra.mxu0 %v2139_v9 }
  0x7a   : > { %2002 = vmatprep.mubr.bf16.mxu0 %v2140_v10 }
  0x81   : > { %2003 = vmatmul.mubr.bf16.gmra.mxu0 %v2141_v11 }
  0x82   : > { %2006 = vmatprep.mubr.bf16.mxu0 %v2142_v12 }
  0x89   : > { %2007 = vmatmul.mubr.bf16.gmra.mxu0 %v2143_v13 }
  0x8a   : > { %2010 = vmatprep.mubr.bf16.mxu0 %v2144_v14 }
  0x91   : > { %2011 = vmatmul.mubr.bf16.gmra.mxu0 %v2145_v15 }
  0x92   : > { %2014 = vmatprep.mubr.bf16.mxu0 %v2146_v16 }
  0x99   : > { %2015 = vmatmul.mubr.bf16.gmra.mxu0 %v2147_v17 }
  0x9a   : > { %2018 = vmatprep.mubr.bf16.mxu0 %v2148_v18 }
  0xa1   : > { %2019 = vmatmul.mubr.bf16.gmra.mxu0 %v2149_v19 }
  0xa2   : > { %2022 = vmatprep.mubr.bf16.mxu0 %v2150_v20 }
  0xa9   : > { %2023 = vmatmul.mubr.bf16.gmra.mxu0 %v2151_v21 }
  0xaa   : > { %2026 = vmatprep.mubr.bf16.mxu0 %v2152_v22 }
  0xb1   : > { %2027 = vmatmul.mubr.bf16.gmra.mxu0 %v2153_v23 }
  0xb2   : > { %1196 = vmatprep.mubr.bf16.mxu0 %v2193_v44  ;;  %v2188_v44 = vld [vmem:[%s2574_s18 + $0xa4] ss:$8 sps:$4 sm:$0xff]  }
 0x139   : > { %v2000_v25 = vpop.f32.mrf.mxu0 }
 0x13b   : > { %v550_v26 = vpop.f32.mrf.mxu0 }
 0x13d   : > { %v2001_v27 = vpop.f32.mrf.mxu0 }
 0x13e   : > { %v1759_v28 = vpack.c.bf16 %v2001_v27, %v2000_v25  ;;  %v2191_v27 = vld [vmem:[%s2574_s18] ss:$8 sps:$4 sm:$0xff]  }
 0x13f   : > { %v553_v29 = vpop.f32.mrf.mxu0 }
 0x140   : > { %1831 = vst [vmem:[#allocation2 + $0x8] sm:$0xff] %v1759_v28   ;;  %v1754_v30 = vpack.c.bf16 %v553_v29, %v550_v26  ;;  %v2170_v26 = vld [vmem:[%s2574_s18 + $0x40] ss:$8 sps:$4 sm:$0xff]   ;;  %v2173_v28 = vld [vmem:[%s2574_s18 + $0x54] ss:$8 sps:$4 sm:$0xff]  }
 0x141   : > { %v2004_v31 = vpop.f32.mrf.mxu0  ;;  %v2197_v29 = vld [vmem:[%s2574_s18 + $0x14] ss:$8 sps:$4 sm:$0xff]  }
 0x142   : > { %1755 = vst [vmem:[#allocation2] sm:$0xff] %v1754_v30   ;;  %v2175_v30 = vld [vmem:[%s2574_s18 + $0x50] ss:$8 sps:$4 sm:$0xff]  }
 0x143   : > { %v566_v32 = vpop.f32.mrf.mxu0 }
 0x145   : > { %v2005_v33 = vpop.f32.mrf.mxu0 }
 0x146   : > { %v1769_v34 = vpack.c.bf16 %v2005_v33, %v2004_v31  ;;  %v2201_v31 = vld [vmem:[%s2574_s18 + $0x10] ss:$8 sps:$4 sm:$0xff]   ;;  %v2203_v33 = vld [vmem:[%s2574_s18 + $0x24] ss:$8 sps:$4 sm:$0xff]  }
 0x147   : > { %v569_v35 = vpop.f32.mrf.mxu0  ;;  %v2167_v23 = vld [vmem:[#allocation2 + $0x8] sm:$0xff]  }
 0x148   : > { %1833 = vst [vmem:[#allocation2 + $0x18] sm:$0xff] %v1769_v34   ;;  %v1764_v36 = vpack.c.bf16 %v569_v35, %v566_v32  ;;  %v2176_v32 = vld [vmem:[%s2574_s18 + $0x64] ss:$8 sps:$4 sm:$0xff]   ;;  %v2178_v34 = vld [vmem:[%s2574_s18 + $0x60] ss:$8 sps:$4 sm:$0xff]  }
 0x149   : > { %v2008_v37 = vpop.f32.mrf.mxu0  ;;  %v2169_v25 = vld [vmem:[#allocation2] sm:$0xff]  }
 0x14a   : > { %1832 = vst [vmem:[#allocation2 + $0x10] sm:$0xff] %v1764_v36   ;;  %v2207_v35 = vld [vmem:[%s2574_s18 + $0x20] ss:$8 sps:$4 sm:$0xff]   ;;  %v2179_v36 = vld [vmem:[%s2574_s18 + $0x74] ss:$8 sps:$4 sm:$0xff]  }
 0x14b   : > { %v582_v38 = vpop.f32.mrf.mxu0 }
 0x14d   : > { %v2009_v39 = vpop.f32.mrf.mxu0 }
 0x14e   : > { %v1779_v40 = vpack.c.bf16 %v2009_v39, %v2008_v37  ;;  %v2209_v37 = vld [vmem:[%s2574_s18 + $0x34] ss:$8 sps:$4 sm:$0xff]   ;;  %v2213_v39 = vld [vmem:[%s2574_s18 + $0x30] ss:$8 sps:$4 sm:$0xff]  }
 0x14f   : > { %v585_v41 = vpop.f32.mrf.mxu0  ;;  %v2163_v19 = vld [vmem:[#allocation2 + $0x18] sm:$0xff]  }
 0x150   : > { %1835 = vst [vmem:[#allocation2 + $0x28] sm:$0xff] %v1779_v40   ;;  %v1774_v42 = vpack.c.bf16 %v585_v41, %v582_v38  ;;  %v2181_v38 = vld [vmem:[%s2574_s18 + $0x70] ss:$8 sps:$4 sm:$0xff]   ;;  %v2182_v40 = vld [vmem:[%s2574_s18 + $0x84] ss:$8 sps:$4 sm:$0xff]  }
 0x151   : > { %v2012_v43 = vpop.f32.mrf.mxu0  ;;  %v2165_v21 = vld [vmem:[#allocation2 + $0x10] sm:$0xff]   ;;  %v2184_v41 = vld [vmem:[%s2574_s18 + $0x80] ss:$8 sps:$4 sm:$0xff]  }
 0x152   : > { %1834 = vst [vmem:[#allocation2 + $0x20] sm:$0xff] %v1774_v42   ;;  %v2185_v42 = vld [vmem:[%s2574_s18 + $0x94] ss:$8 sps:$4 sm:$0xff]  }
 0x153   : > { %v598_v45 = vpop.f32.mrf.mxu0 }
 0x155   : > { %v2013_v46 = vpop.f32.mrf.mxu0 }
 0x156   : > { %v1789_v47 = vpack.c.bf16 %v2013_v46, %v2012_v43  ;;  %v2187_v43 = vld [vmem:[%s2574_s18 + $0x90] ss:$8 sps:$4 sm:$0xff]   ;;  %v2194_v46 = vld [vmem:[%s2574_s18 + $0xb4] ss:$8 sps:$4 sm:$0xff]  }
 0x157   : > { %v601_v48 = vpop.f32.mrf.mxu0  ;;  %v2159_v15 = vld [vmem:[#allocation2 + $0x28] sm:$0xff]  }
 0x158   : > { %1837 = vst [vmem:[#allocation2 + $0x38] sm:$0xff] %v1789_v47   ;;  %v1784_v49 = vpack.c.bf16 %v601_v48, %v598_v45  ;;  %v2190_v45 = vld [vmem:[%s2574_s18 + $0xa0] ss:$8 sps:$4 sm:$0xff]   ;;  %v2196_v47 = vld [vmem:[%s2574_s18 + $0xb0] ss:$8 sps:$4 sm:$0xff]  }
 0x159   : > { %v2016_v50 = vpop.f32.mrf.mxu0  ;;  %v2161_v17 = vld [vmem:[#allocation2 + $0x20] sm:$0xff]  }
 0x15a   : > { %1836 = vst [vmem:[#allocation2 + $0x30] sm:$0xff] %v1784_v49   ;;  %v2199_v48 = vld [vmem:[%s2574_s18 + $0xc4] ss:$8 sps:$4 sm:$0xff]   ;;  %v2202_v49 = vld [vmem:[%s2574_s18 + $0xc0] ss:$8 sps:$4 sm:$0xff]  }
 0x15b   : > { %v614_v51 = vpop.f32.mrf.mxu0 }
 0x15d   : > { %v2017_v52 = vpop.f32.mrf.mxu0 }
 0x15e   : > { %v1799_v53 = vpack.c.bf16 %v2017_v52, %v2016_v50  ;;  %v2205_v50 = vld [vmem:[%s2574_s18 + $0xd4] ss:$8 sps:$4 sm:$0xff]   ;;  %v2211_v52 = vld [vmem:[%s2574_s18 + $0xe4] ss:$8 sps:$4 sm:$0xff]  }
 0x15f   : > { %v617_v54 = vpop.f32.mrf.mxu0  ;;  %v2155_v11 = vld [vmem:[#allocation2 + $0x38] sm:$0xff]  }
 0x160   : > { %1839 = vst [vmem:[#allocation2 + $0x48] sm:$0xff] %v1799_v53   ;;  %v1794_v55 = vpack.c.bf16 %v617_v54, %v614_v51  ;;  %v2208_v51 = vld [vmem:[%s2574_s18 + $0xd0] ss:$8 sps:$4 sm:$0xff]   ;;  %v2214_v53 = vld [vmem:[%s2574_s18 + $0xe0] ss:$8 sps:$4 sm:$0xff]  }
 0x161   : > { %v2020_v56 = vpop.f32.mrf.mxu0  ;;  %v2157_v13 = vld [vmem:[#allocation2 + $0x30] sm:$0xff]  }
 0x162   : > { %1838 = vst [vmem:[#allocation2 + $0x40] sm:$0xff] %v1794_v55   ;;  %v2215_v54 = vld [vmem:[%s2574_s18 + $0xf4] ss:$8 sps:$4 sm:$0xff]   ;;  %v2217_v55 = vld [vmem:[%s2574_s18 + $0xf0] ss:$8 sps:$4 sm:$0xff]  }
 0x163   : > { %v630_v57 = vpop.f32.mrf.mxu0 }
 0x165   : > { %v2021_v58 = vpop.f32.mrf.mxu0 }
 0x166   : > { %v1809_v59 = vpack.c.bf16 %v2021_v58, %v2020_v56  ;;  %v2643_v58 = vld [vmem:[%s2806_s4] ss:$0 sm:$0xff] }
 0x167   : > { %v633_v60 = vpop.f32.mrf.mxu0  ;;  %v2166_v22 = vld [vmem:[#allocation2 + $0x48] sm:$0xff]  }
 0x168   : > { %1841 = vst [vmem:[#allocation2 + $0x58] sm:$0xff] %v1809_v59   ;;  %v1804_v61 = vpack.c.bf16 %v633_v60, %v630_v57 }
 0x169   : > { %v2024_v62 = vpop.f32.mrf.mxu0  ;;  %v2168_v24 = vld [vmem:[#allocation2 + $0x40] sm:$0xff]  }
 0x16a   : > { %1840 = vst [vmem:[#allocation2 + $0x50] sm:$0xff] %v1804_v61  }
 0x16b   : > { %v646_v63 = vpop.f32.mrf.mxu0 }
 0x16d   : > { %v2025_v0 = vpop.f32.mrf.mxu0 }
 0x16e   : > { %v1819_v1 = vpack.c.bf16 %v2025_v0, %v2024_v62 }
 0x16f   : > { %v649_v2 = vpop.f32.mrf.mxu0  ;;  %v2162_v18 = vld [vmem:[#allocation2 + $0x58] sm:$0xff]  }
 0x170   : > { %1843 = vst [vmem:[#allocation2 + $0x68] sm:$0xff] %v1819_v1   ;;  %v1814_v3 = vpack.c.bf16 %v649_v2, %v646_v63  ;;  %v2645_v63 = vstv %s1325_s0 }
 0x171   : > { %v2028_v4 = vpop.f32.mrf.mxu0  ;;  %v2164_v20 = vld [vmem:[#allocation2 + $0x50] sm:$0xff]  }
 0x172   : > { %1842 = vst [vmem:[#allocation2 + $0x60] sm:$0xff] %v1814_v3  }
 0x173   : > { %v662_v5 = vpop.f32.mrf.mxu0 }
 0x175   : > { %v2029_v6 = vpop.f32.mrf.mxu0 }
 0x176   : > { %v1829_v7 = vpack.c.bf16 %v2029_v6, %v2028_v4 }
 0x177   : > { %v665_v8 = vpop.f32.mrf.mxu0  ;;  %v2158_v14 = vld [vmem:[#allocation2 + $0x68] sm:$0xff]  }
 0x178   : > { %1845 = vst [vmem:[#allocation2 + $0x78] sm:$0xff] %v1829_v7   ;;  %v1824_v9 = vpack.c.bf16 %v665_v8, %v662_v5 }
 0x179   : > { %v2160_v16 = vld [vmem:[#allocation2 + $0x60] sm:$0xff]  }
 0x17a   : > { %1844 = vst [vmem:[#allocation2 + $0x70] sm:$0xff] %v1824_v9  }
 0x17f   : > { %v2154_v10 = vld [vmem:[#allocation2 + $0x78] sm:$0xff]  }
 0x180   : > { %1870 = vmatprep.subr.bf16.mxu0 %v2154_v10  ;;  %2030 = vmatprep.subr.bf16.mxu1 %v2154_v10 }
 0x181   : > { %v2156_v12 = vld [vmem:[#allocation2 + $0x70] sm:$0xff]   ;;  %1871 = vmatpush3.bf16.msra.mxu0 %v2155_v11  ;;  %2038 = vmatpush3.bf16.msra.mxu1 %v2155_v11 }
 0x182   : > { %1872 = vmatprep.subr.bf16.mxu0 %v2156_v12  ;;  %2031 = vmatprep.subr.bf16.mxu1 %v2156_v12 }
 0x185   : > { %1873 = vmatpush3.bf16.msra.mxu0 %v2157_v13  ;;  %2039 = vmatpush3.bf16.msra.mxu1 %v2157_v13 }
 0x186   : > { %1874 = vmatprep.subr.bf16.mxu0 %v2158_v14  ;;  %2032 = vmatprep.subr.bf16.mxu1 %v2158_v14 }
 0x189   : > { %1875 = vmatpush3.bf16.msra.mxu0 %v2159_v15  ;;  %2040 = vmatpush3.bf16.msra.mxu1 %v2159_v15 }
 0x18a   : > { %1876 = vmatprep.subr.bf16.mxu0 %v2160_v16  ;;  %2033 = vmatprep.subr.bf16.mxu1 %v2160_v16 }
 0x18d   : > { %1877 = vmatpush3.bf16.msra.mxu0 %v2161_v17  ;;  %2041 = vmatpush3.bf16.msra.mxu1 %v2161_v17 }
 0x18e   : > { %1878 = vmatprep.subr.bf16.mxu0 %v2162_v18  ;;  %2034 = vmatprep.subr.bf16.mxu1 %v2162_v18 }
 0x191   : > { %1879 = vmatpush3.bf16.msra.mxu0 %v2163_v19  ;;  %2042 = vmatpush3.bf16.msra.mxu1 %v2163_v19 }
 0x192   : > { %1880 = vmatprep.subr.bf16.mxu0 %v2164_v20  ;;  %2035 = vmatprep.subr.bf16.mxu1 %v2164_v20 }
 0x195   : > { %1881 = vmatpush3.bf16.msra.mxu0 %v2165_v21  ;;  %2043 = vmatpush3.bf16.msra.mxu1 %v2165_v21 }
 0x196   : > { %1882 = vmatprep.subr.bf16.mxu0 %v2166_v22  ;;  %2036 = vmatprep.subr.bf16.mxu1 %v2166_v22 }
 0x199   : > { %1883 = vmatpush3.bf16.msra.mxu0 %v2167_v23  ;;  %2044 = vmatpush3.bf16.msra.mxu1 %v2167_v23 }
 0x19a   : > { %1884 = vmatprep.subr.bf16.mxu0 %v2168_v24  ;;  %2037 = vmatprep.subr.bf16.mxu1 %v2168_v24 }
 0x19d   : > { %1885 = vmatpush3.bf16.msra.mxu0 %v2169_v25  ;;  %2045 = vmatpush3.bf16.msra.mxu1 %v2169_v25 }
 0x1a0   : > { %1229 = vmatmul.mubr.bf16.vlgmr.msra.gmra.mxu1 %v2170_v26  ;;  %1197 = vmatmul.mubr.bf16.vlgmr.msra.gmra.mxu0 %v2191_v27 }
 0x1a1   : > { %1236 = vmatprep.mubr.bf16.mxu1 %v2173_v28  ;;  %1204 = vmatprep.mubr.bf16.mxu0 %v2197_v29 }
 0x1a8   : > { %1237 = vmatmul.mubr.bf16.gmra.mxu1 %v2175_v30  ;;  %1205 = vmatmul.mubr.bf16.gmra.mxu0 %v2201_v31 }
 0x1a9   : > { %1244 = vmatprep.mubr.bf16.mxu1 %v2176_v32  ;;  %1212 = vmatprep.mubr.bf16.mxu0 %v2203_v33 }
 0x1b0   : > { %1245 = vmatmul.mubr.bf16.gmra.mxu1 %v2178_v34  ;;  %1213 = vmatmul.mubr.bf16.gmra.mxu0 %v2207_v35 }
 0x1b1   : > { %1252 = vmatprep.mubr.bf16.mxu1 %v2179_v36  ;;  %1220 = vmatprep.mubr.bf16.mxu0 %v2209_v37 }
 0x1b8   : > { %1253 = vmatmul.mubr.bf16.gmra.mxu1 %v2181_v38  ;;  %1221 = vmatmul.mubr.bf16.gmra.mxu0 %v2213_v39 }
 0x1b9   : > { %1260 = vmatprep.mubr.bf16.mxu1 %v2182_v40 }
 0x1c0   : > { %1261 = vmatmul.mubr.bf16.gmra.mxu1 %v2184_v41 }
 0x1c1   : > { %1268 = vmatprep.mubr.bf16.mxu1 %v2185_v42 }
 0x1c8   : > { %1269 = vmatmul.mubr.bf16.gmra.mxu1 %v2187_v43 }
 0x1c9   : > { %1276 = vmatprep.mubr.bf16.mxu1 %v2188_v44 }
 0x1d0   : > { %1277 = vmatmul.mubr.bf16.gmra.mxu1 %v2190_v45 }
 0x1d1   : > { %1284 = vmatprep.mubr.bf16.mxu1 %v2194_v46 }
 0x1d8   : > { %1285 = vmatmul.mubr.bf16.gmra.mxu1 %v2196_v47 }
 0x1d9   : > { %1292 = vmatprep.mubr.bf16.mxu1 %v2199_v48 }
 0x1e0   : > { %1293 = vmatmul.mubr.bf16.gmra.mxu1 %v2202_v49 }
 0x1e1   : > { %1300 = vmatprep.mubr.bf16.mxu1 %v2205_v50 }
 0x1e8   : > { %1301 = vmatmul.mubr.bf16.gmra.mxu1 %v2208_v51 }
 0x1e9   : > { %1308 = vmatprep.mubr.bf16.mxu1 %v2211_v52 }
 0x1f0   : > { %1309 = vmatmul.mubr.bf16.gmra.mxu1 %v2214_v53 }
 0x1f1   : > { %1316 = vmatprep.mubr.bf16.mxu1 %v2215_v54 }
 0x1f8   : > { %1317 = vmatmul.mubr.bf16.gmra.mxu1 %v2217_v55 }
 0x260   : > { %v1910_v56 = vpop.f32.mrf.mxu1  ;;  %v1886_v57 = vpop.f32.mrf.mxu0 }
 0x262   : > { %v1911_v59 = vpop.f32.mrf.mxu1  ;;  %v1887_v60 = vpop.f32.mrf.mxu0 }
 0x263   : > { %v1912_v61 = vadd.f32 %v1911_v59, %v1910_v56  ;;  %v1888_v62 = vadd.f32 %v1887_v60, %v1886_v57 }
 0x264   : > { %v1913_v0 = vpop.f32.mrf.mxu1  ;;  %v1889_v1 = vpop.f32.mrf.mxu0 }
 0x265   : > { %v1231_v2 = vadd.f32 %v1912_v61, %v2643_v58  ;;  %v1199_v3 = vadd.f32 %v1888_v62, %v2643_v58 }
 0x266   : > { %v1914_v4 = vpop.f32.mrf.mxu1  ;;  %v1890_v5 = vpop.f32.mrf.mxu0 }
 0x267   : > { %vm1334_vm0 = vcmp.ge.f32.partialorder %v1231_v2, 0.0  ;;  %v1367_v6 = vmul.f32 %v2645_v63, %v1231_v2  ;;  %v1915_v7 = vadd.f32 %v1914_v4, %v1913_v0  ;;  %vm1326_vm1 = vcmp.ge.f32.partialorder %v1199_v3, 0.0 }
 0x268   : > { %v1916_v8 = vpop.f32.mrf.mxu1  ;;  %v1359_v9 = vmul.f32 %v2645_v63, %v1199_v3  ;;  %v1891_v10 = vadd.f32 %v1890_v5, %v1889_v1  ;;  %v1892_v11 = vpop.f32.mrf.mxu0 }
 0x269   : > { %v1399_v12 = vsel %vm1334_vm0, %v1231_v2, %v1367_v6  ;;  %v1234_v13 = vadd.f32 %v1915_v7, %v2643_v58 }
 0x26a   : > { %1431 = vst [vmem:[%s2654_s17 + $0x40] sm:$0xff] %v1399_v12  ;;  %v1917_v14 = vpop.f32.mrf.mxu1  ;;  %v1391_v15 = vsel %vm1326_vm1, %v1199_v3, %v1359_v9  ;;  %v1202_v16 = vadd.f32 %v1891_v10, %v2643_v58  ;;  %v1893_v17 = vpop.f32.mrf.mxu0 }
 0x26b   : > { %vm1335_vm2 = vcmp.ge.f32.partialorder %v1234_v13, 0.0  ;;  %v1368_v18 = vmul.f32 %v2645_v63, %v1234_v13  ;;  %v1918_v19 = vadd.f32 %v1917_v14, %v1916_v8  ;;  %1423 = vst [vmem:[%s2654_s17] sm:$0xff] %v1391_v15  ;;  %v1894_v20 = vadd.f32 %v1893_v17, %v1892_v11 }
 0x26c   : > { %v1919_v21 = vpop.f32.mrf.mxu1  ;;  %vm1327_vm3 = vcmp.ge.f32.partialorder %v1202_v16, 0.0  ;;  %v1360_v22 = vmul.f32 %v2645_v63, %v1202_v16  ;;  %v1895_v23 = vpop.f32.mrf.mxu0 }
 0x26d   : > { %v1400_v24 = vsel %vm1335_vm2, %v1234_v13, %v1368_v18  ;;  %v1239_v25 = vadd.f32 %v1918_v19, %v2643_v58  ;;  %v1207_v26 = vadd.f32 %v1894_v20, %v2643_v58 }
 0x26e   : > { %1432 = vst [vmem:[%s2654_s17 + $0x48] sm:$0xff] %v1400_v24  ;;  %v1920_v27 = vpop.f32.mrf.mxu1  ;;  %v1392_v28 = vsel %vm1327_vm3, %v1202_v16, %v1360_v22  ;;  %v1896_v29 = vpop.f32.mrf.mxu0 }
 0x26f   : > { %vm1336_vm4 = vcmp.ge.f32.partialorder %v1239_v25, 0.0  ;;  %v1369_v30 = vmul.f32 %v2645_v63, %v1239_v25  ;;  %v1921_v31 = vadd.f32 %v1920_v27, %v1919_v21  ;;  %1424 = vst [vmem:[%s2654_s17 + $0x8] sm:$0xff] %v1392_v28  ;;  %vm1328_vm5 = vcmp.ge.f32.partialorder %v1207_v26, 0.0 }
 0x270   : > { %v1922_v32 = vpop.f32.mrf.mxu1  ;;  %v1361_v33 = vmul.f32 %v2645_v63, %v1207_v26  ;;  %v1897_v34 = vadd.f32 %v1896_v29, %v1895_v23  ;;  %v1898_v35 = vpop.f32.mrf.mxu0 }
 0x271   : > { %v1401_v36 = vsel %vm1336_vm4, %v1239_v25, %v1369_v30  ;;  %v1242_v37 = vadd.f32 %v1921_v31, %v2643_v58 }
 0x272   : > { %1433 = vst [vmem:[%s2654_s17 + $0x50] sm:$0xff] %v1401_v36  ;;  %v1923_v38 = vpop.f32.mrf.mxu1  ;;  %v1393_v39 = vsel %vm1328_vm5, %v1207_v26, %v1361_v33  ;;  %v1210_v40 = vadd.f32 %v1897_v34, %v2643_v58  ;;  %v1899_v41 = vpop.f32.mrf.mxu0 }
 0x273   : > { %vm1337_vm6 = vcmp.ge.f32.partialorder %v1242_v37, 0.0  ;;  %v1370_v42 = vmul.f32 %v2645_v63, %v1242_v37  ;;  %v1924_v43 = vadd.f32 %v1923_v38, %v1922_v32  ;;  %1425 = vst [vmem:[%s2654_s17 + $0x10] sm:$0xff] %v1393_v39  ;;  %v1900_v44 = vadd.f32 %v1899_v41, %v1898_v35 }
 0x274   : > { %v1925_v45 = vpop.f32.mrf.mxu1  ;;  %vm1329_vm7 = vcmp.ge.f32.partialorder %v1210_v40, 0.0  ;;  %v1362_v46 = vmul.f32 %v2645_v63, %v1210_v40  ;;  %v1901_v47 = vpop.f32.mrf.mxu0 }
 0x275   : > { %v1402_v48 = vsel %vm1337_vm6, %v1242_v37, %v1370_v42  ;;  %v1247_v49 = vadd.f32 %v1924_v43, %v2643_v58  ;;  %v1215_v50 = vadd.f32 %v1900_v44, %v2643_v58 }
 0x276   : > { %1434 = vst [vmem:[%s2654_s17 + $0x58] sm:$0xff] %v1402_v48  ;;  %v1926_v51 = vpop.f32.mrf.mxu1  ;;  %v1394_v52 = vsel %vm1329_vm7, %v1210_v40, %v1362_v46  ;;  %v1902_v53 = vpop.f32.mrf.mxu0 }
 0x277   : > { %vm1338_vm8 = vcmp.ge.f32.partialorder %v1247_v49, 0.0  ;;  %v1371_v54 = vmul.f32 %v2645_v63, %v1247_v49  ;;  %v1927_v55 = vadd.f32 %v1926_v51, %v1925_v45  ;;  %1426 = vst [vmem:[%s2654_s17 + $0x18] sm:$0xff] %v1394_v52  ;;  %vm1330_vm9 = vcmp.ge.f32.partialorder %v1215_v50, 0.0 }
 0x278   : > { %v1928_v56 = vpop.f32.mrf.mxu1  ;;  %v1363_v57 = vmul.f32 %v2645_v63, %v1215_v50  ;;  %v1903_v59 = vadd.f32 %v1902_v53, %v1901_v47  ;;  %v1904_v60 = vpop.f32.mrf.mxu0 }
 0x279   : > { %v1403_v61 = vsel %vm1338_vm8, %v1247_v49, %v1371_v54  ;;  %v1250_v62 = vadd.f32 %v1927_v55, %v2643_v58 }
 0x27a   : > { %1435 = vst [vmem:[%s2654_s17 + $0x60] sm:$0xff] %v1403_v61  ;;  %v1929_v0 = vpop.f32.mrf.mxu1  ;;  %v1395_v1 = vsel %vm1330_vm9, %v1215_v50, %v1363_v57  ;;  %v1218_v2 = vadd.f32 %v1903_v59, %v2643_v58  ;;  %v1905_v3 = vpop.f32.mrf.mxu0 }
 0x27b   : > { %vm1339_vm10 = vcmp.ge.f32.partialorder %v1250_v62, 0.0  ;;  %v1372_v4 = vmul.f32 %v2645_v63, %v1250_v62  ;;  %v1930_v5 = vadd.f32 %v1929_v0, %v1928_v56  ;;  %1427 = vst [vmem:[%s2654_s17 + $0x20] sm:$0xff] %v1395_v1  ;;  %v1906_v6 = vadd.f32 %v1905_v3, %v1904_v60 }
 0x27c   : > { %v1931_v7 = vpop.f32.mrf.mxu1  ;;  %vm1331_vm11 = vcmp.ge.f32.partialorder %v1218_v2, 0.0  ;;  %v1364_v8 = vmul.f32 %v2645_v63, %v1218_v2  ;;  %v1907_v9 = vpop.f32.mrf.mxu0 }
 0x27d   : > { %v1404_v10 = vsel %vm1339_vm10, %v1250_v62, %v1372_v4  ;;  %v1255_v11 = vadd.f32 %v1930_v5, %v2643_v58  ;;  %v1223_v12 = vadd.f32 %v1906_v6, %v2643_v58 }
 0x27e   : > { %1436 = vst [vmem:[%s2654_s17 + $0x68] sm:$0xff] %v1404_v10  ;;  %v1932_v13 = vpop.f32.mrf.mxu1  ;;  %v1396_v14 = vsel %vm1331_vm11, %v1218_v2, %v1364_v8  ;;  %v1908_v15 = vpop.f32.mrf.mxu0 }
 0x27f   : > { %vm1340_vm12 = vcmp.ge.f32.partialorder %v1255_v11, 0.0  ;;  %v1373_v16 = vmul.f32 %v2645_v63, %v1255_v11  ;;  %v1933_v17 = vadd.f32 %v1932_v13, %v1931_v7  ;;  %1428 = vst [vmem:[%s2654_s17 + $0x28] sm:$0xff] %v1396_v14  ;;  %vm1332_vm13 = vcmp.ge.f32.partialorder %v1223_v12, 0.0 }
 0x280   : > { %v1934_v18 = vpop.f32.mrf.mxu1  ;;  %v1365_v19 = vmul.f32 %v2645_v63, %v1223_v12  ;;  %v1909_v20 = vadd.f32 %v1908_v15, %v1907_v9 }
 0x281   : > { %v1405_v21 = vsel %vm1340_vm12, %v1255_v11, %v1373_v16  ;;  %v1258_v22 = vadd.f32 %v1933_v17, %v2643_v58 }
 0x282   : > { %1437 = vst [vmem:[%s2654_s17 + $0x70] sm:$0xff] %v1405_v21  ;;  %v1935_v23 = vpop.f32.mrf.mxu1  ;;  %v1397_v24 = vsel %vm1332_vm13, %v1223_v12, %v1365_v19  ;;  %v1226_v25 = vadd.f32 %v1909_v20, %v2643_v58 }
 0x283   : > { %vm1341_vm14 = vcmp.ge.f32.partialorder %v1258_v22, 0.0  ;;  %v1374_v26 = vmul.f32 %v2645_v63, %v1258_v22  ;;  %v1936_v27 = vadd.f32 %v1935_v23, %v1934_v18  ;;  %1429 = vst [vmem:[%s2654_s17 + $0x30] sm:$0xff] %v1397_v24 }
 0x284   : > { %v1937_v28 = vpop.f32.mrf.mxu1  ;;  %vm1333_vm15 = vcmp.ge.f32.partialorder %v1226_v25, 0.0  ;;  %v1366_v29 = vmul.f32 %v2645_v63, %v1226_v25 }
 0x285   : > { %v1406_v30 = vsel %vm1341_vm14, %v1258_v22, %v1374_v26  ;;  %v1263_v31 = vadd.f32 %v1936_v27, %v2643_v58 }
 0x286   : > { %1438 = vst [vmem:[%s2654_s17 + $0x78] sm:$0xff] %v1406_v30  ;;  %v1938_v32 = vpop.f32.mrf.mxu1  ;;  %v1398_v33 = vsel %vm1333_vm15, %v1226_v25, %v1366_v29 }
 0x287   : > { %vm1342_vm0 = vcmp.ge.f32.partialorder %v1263_v31, 0.0  ;;  %v1375_v34 = vmul.f32 %v2645_v63, %v1263_v31  ;;  %v1939_v35 = vadd.f32 %v1938_v32, %v1937_v28  ;;  %1430 = vst [vmem:[%s2654_s17 + $0x38] sm:$0xff] %v1398_v33 }
 0x288   : > { %v1940_v36 = vpop.f32.mrf.mxu1 }
 0x289   : > { %v1407_v37 = vsel %vm1342_vm0, %v1263_v31, %v1375_v34  ;;  %v1266_v38 = vadd.f32 %v1939_v35, %v2643_v58 }
 0x28a   : > { %1439 = vst [vmem:[%s2654_s17 + $0x80] sm:$0xff] %v1407_v37  ;;  %v1941_v39 = vpop.f32.mrf.mxu1 }
 0x28b   : > { %vm1343_vm1 = vcmp.ge.f32.partialorder %v1266_v38, 0.0  ;;  %v1376_v40 = vmul.f32 %v2645_v63, %v1266_v38  ;;  %v1942_v41 = vadd.f32 %v1941_v39, %v1940_v36 }
 0x28c   : > { %v1943_v42 = vpop.f32.mrf.mxu1 }
 0x28d   : > { %v1408_v43 = vsel %vm1343_vm1, %v1266_v38, %v1376_v40  ;;  %v1271_v44 = vadd.f32 %v1942_v41, %v2643_v58 }
 0x28e   : > { %1440 = vst [vmem:[%s2654_s17 + $0x88] sm:$0xff] %v1408_v43  ;;  %v1944_v45 = vpop.f32.mrf.mxu1 }
 0x28f   : > { %vm1344_vm2 = vcmp.ge.f32.partialorder %v1271_v44, 0.0  ;;  %v1377_v46 = vmul.f32 %v2645_v63, %v1271_v44  ;;  %v1945_v47 = vadd.f32 %v1944_v45, %v1943_v42 }
 0x290   : > { %v1946_v48 = vpop.f32.mrf.mxu1 }
 0x291   : > { %v1409_v49 = vsel %vm1344_vm2, %v1271_v44, %v1377_v46  ;;  %v1274_v50 = vadd.f32 %v1945_v47, %v2643_v58 }
 0x292   : > { %1441 = vst [vmem:[%s2654_s17 + $0x90] sm:$0xff] %v1409_v49  ;;  %v1947_v51 = vpop.f32.mrf.mxu1 }
 0x293   : > { %vm1345_vm3 = vcmp.ge.f32.partialorder %v1274_v50, 0.0  ;;  %v1378_v52 = vmul.f32 %v2645_v63, %v1274_v50  ;;  %v1948_v53 = vadd.f32 %v1947_v51, %v1946_v48 }
 0x294   : > { %v1949_v54 = vpop.f32.mrf.mxu1 }
 0x295   : > { %v1410_v55 = vsel %vm1345_vm3, %v1274_v50, %v1378_v52  ;;  %v1279_v56 = vadd.f32 %v1948_v53, %v2643_v58 }
 0x296   : > { %1442 = vst [vmem:[%s2654_s17 + $0x98] sm:$0xff] %v1410_v55  ;;  %v1950_v57 = vpop.f32.mrf.mxu1 }
 0x297   : > { %vm1346_vm4 = vcmp.ge.f32.partialorder %v1279_v56, 0.0  ;;  %v1379_v59 = vmul.f32 %v2645_v63, %v1279_v56  ;;  %v1951_v60 = vadd.f32 %v1950_v57, %v1949_v54 }
 0x298   : > { %v1952_v61 = vpop.f32.mrf.mxu1 }
 0x299   : > { %v1411_v62 = vsel %vm1346_vm4, %v1279_v56, %v1379_v59  ;;  %v1282_v0 = vadd.f32 %v1951_v60, %v2643_v58 }
 0x29a   : > { %1443 = vst [vmem:[%s2654_s17 + $0xa0] sm:$0xff] %v1411_v62  ;;  %v1953_v1 = vpop.f32.mrf.mxu1 }
 0x29b   : > { %vm1347_vm5 = vcmp.ge.f32.partialorder %v1282_v0, 0.0  ;;  %v1380_v2 = vmul.f32 %v2645_v63, %v1282_v0  ;;  %v1954_v3 = vadd.f32 %v1953_v1, %v1952_v61 }
 0x29c   : > { %v1955_v4 = vpop.f32.mrf.mxu1 }
 0x29d   : > { %v1412_v5 = vsel %vm1347_vm5, %v1282_v0, %v1380_v2  ;;  %v1287_v6 = vadd.f32 %v1954_v3, %v2643_v58 }
 0x29e   : > { %1444 = vst [vmem:[%s2654_s17 + $0xa8] sm:$0xff] %v1412_v5  ;;  %v1956_v7 = vpop.f32.mrf.mxu1 }
 0x29f   : > { %vm1348_vm6 = vcmp.ge.f32.partialorder %v1287_v6, 0.0  ;;  %v1381_v8 = vmul.f32 %v2645_v63, %v1287_v6  ;;  %v1957_v9 = vadd.f32 %v1956_v7, %v1955_v4 }
 0x2a0   : > { %v1958_v10 = vpop.f32.mrf.mxu1 }
 0x2a1   : > { %v1413_v11 = vsel %vm1348_vm6, %v1287_v6, %v1381_v8  ;;  %v1290_v12 = vadd.f32 %v1957_v9, %v2643_v58 }
 0x2a2   : > { %1445 = vst [vmem:[%s2654_s17 + $0xb0] sm:$0xff] %v1413_v11  ;;  %v1959_v13 = vpop.f32.mrf.mxu1 }
 0x2a3   : > { %vm1349_vm7 = vcmp.ge.f32.partialorder %v1290_v12, 0.0  ;;  %v1382_v14 = vmul.f32 %v2645_v63, %v1290_v12  ;;  %v1960_v15 = vadd.f32 %v1959_v13, %v1958_v10 }
 0x2a4   : > { %v1961_v16 = vpop.f32.mrf.mxu1 }
 0x2a5   : > { %v1414_v17 = vsel %vm1349_vm7, %v1290_v12, %v1382_v14  ;;  %v1295_v18 = vadd.f32 %v1960_v15, %v2643_v58 }
 0x2a6   : > { %1446 = vst [vmem:[%s2654_s17 + $0xb8] sm:$0xff] %v1414_v17  ;;  %v1962_v19 = vpop.f32.mrf.mxu1 }
 0x2a7   : > { %vm1350_vm8 = vcmp.ge.f32.partialorder %v1295_v18, 0.0  ;;  %v1383_v20 = vmul.f32 %v2645_v63, %v1295_v18  ;;  %v1963_v21 = vadd.f32 %v1962_v19, %v1961_v16 }
 0x2a8   : > { %v1964_v22 = vpop.f32.mrf.mxu1 }
 0x2a9   : > { %v1415_v23 = vsel %vm1350_vm8, %v1295_v18, %v1383_v20  ;;  %v1298_v24 = vadd.f32 %v1963_v21, %v2643_v58 }
 0x2aa   : > { %1447 = vst [vmem:[%s2654_s17 + $0xc0] sm:$0xff] %v1415_v23  ;;  %v1965_v25 = vpop.f32.mrf.mxu1 }
 0x2ab   : > { %vm1351_vm9 = vcmp.ge.f32.partialorder %v1298_v24, 0.0  ;;  %v1384_v26 = vmul.f32 %v2645_v63, %v1298_v24  ;;  %v1966_v27 = vadd.f32 %v1965_v25, %v1964_v22 }
 0x2ac   : > { %v1967_v28 = vpop.f32.mrf.mxu1 }
 0x2ad   : > { %v1416_v29 = vsel %vm1351_vm9, %v1298_v24, %v1384_v26  ;;  %v1303_v30 = vadd.f32 %v1966_v27, %v2643_v58 }
 0x2ae   : > { %1448 = vst [vmem:[%s2654_s17 + $0xc8] sm:$0xff] %v1416_v29  ;;  %v1968_v31 = vpop.f32.mrf.mxu1 }
 0x2af   : > { %vm1352_vm10 = vcmp.ge.f32.partialorder %v1303_v30, 0.0  ;;  %v1385_v32 = vmul.f32 %v2645_v63, %v1303_v30  ;;  %v1969_v33 = vadd.f32 %v1968_v31, %v1967_v28 }
 0x2b0   : > { %v1970_v34 = vpop.f32.mrf.mxu1 }
 0x2b1   : > { %v1417_v35 = vsel %vm1352_vm10, %v1303_v30, %v1385_v32  ;;  %v1306_v36 = vadd.f32 %v1969_v33, %v2643_v58 }
 0x2b2   : > { %1449 = vst [vmem:[%s2654_s17 + $0xd0] sm:$0xff] %v1417_v35  ;;  %v1971_v37 = vpop.f32.mrf.mxu1 }
 0x2b3   : > { %vm1353_vm11 = vcmp.ge.f32.partialorder %v1306_v36, 0.0  ;;  %v1386_v38 = vmul.f32 %v2645_v63, %v1306_v36  ;;  %v1972_v39 = vadd.f32 %v1971_v37, %v1970_v34 }
 0x2b4   : > { %v1973_v40 = vpop.f32.mrf.mxu1 }
 0x2b5   : > { %v1418_v41 = vsel %vm1353_vm11, %v1306_v36, %v1386_v38  ;;  %v1311_v42 = vadd.f32 %v1972_v39, %v2643_v58 }
 0x2b6   : > { %1450 = vst [vmem:[%s2654_s17 + $0xd8] sm:$0xff] %v1418_v41  ;;  %v1974_v43 = vpop.f32.mrf.mxu1 }
 0x2b7   : > { %vm1354_vm12 = vcmp.ge.f32.partialorder %v1311_v42, 0.0  ;;  %v1387_v44 = vmul.f32 %v2645_v63, %v1311_v42  ;;  %v1975_v45 = vadd.f32 %v1974_v43, %v1973_v40 }
 0x2b8   : > { %v1976_v46 = vpop.f32.mrf.mxu1 }
 0x2b9   : > { %v1419_v47 = vsel %vm1354_vm12, %v1311_v42, %v1387_v44  ;;  %v1314_v48 = vadd.f32 %v1975_v45, %v2643_v58 }
 0x2ba   : > { %1451 = vst [vmem:[%s2654_s17 + $0xe0] sm:$0xff] %v1419_v47  ;;  %v1977_v49 = vpop.f32.mrf.mxu1 }
 0x2bb   : > { %vm1355_vm13 = vcmp.ge.f32.partialorder %v1314_v48, 0.0  ;;  %v1388_v50 = vmul.f32 %v2645_v63, %v1314_v48  ;;  %v1978_v51 = vadd.f32 %v1977_v49, %v1976_v46 }
 0x2bc   : > { %v1979_v52 = vpop.f32.mrf.mxu1 }
 0x2bd   : > { %v1420_v53 = vsel %vm1355_vm13, %v1314_v48, %v1388_v50  ;;  %v1319_v54 = vadd.f32 %v1978_v51, %v2643_v58 }
 0x2be   : > { %1452 = vst [vmem:[%s2654_s17 + $0xe8] sm:$0xff] %v1420_v53  ;;  %v1980_v55 = vpop.f32.mrf.mxu1 }
 0x2bf   : > { %vm1356_vm14 = vcmp.ge.f32.partialorder %v1319_v54, 0.0  ;;  %v1389_v56 = vmul.f32 %v2645_v63, %v1319_v54  ;;  %v1981_v57 = vadd.f32 %v1980_v55, %v1979_v52 }
 0x2c1   : > { %v1421_v59 = vsel %vm1356_vm14, %v1319_v54, %v1389_v56  ;;  %v1322_v60 = vadd.f32 %v1981_v57, %v2643_v58 }
 0x2c2   : > { %1453 = vst [vmem:[%s2654_s17 + $0xf0] sm:$0xff] %v1421_v59 }
 0x2c3   : > { %vm1357_vm15 = vcmp.ge.f32.partialorder %v1322_v60, 0.0  ;;  %v1390_v61 = vmul.f32 %v2645_v63, %v1322_v60 }
 0x2c5   : > { %v1422_v62 = vsel %vm1357_vm15, %v1322_v60, %v1390_v61 }
 0x2c6   : > { %1454 = vst [vmem:[%s2654_s17 + $0xf8] sm:$0xff] %v1422_v62 }
 0x2c7   : > { %2313 = shalt.err (!%p2310_p6)
}
 0x2c8   : > { %s2314_s3 = scalar_lea.hbm %s2751_s30, 4096  ;;  %s2318_s18 = scalar_lea.hbm %s2807_s5, 8192 }
 0x2c9   : > { %p2315_p9 = scmp.ne.s32.totalorder %s2751_s30, %s2314_s3  ;;  %p2319_p11 = scmp.lt.s32.totalorder %s2751_s30, %s2807_s5 }
 0x2ca   : > { %p2320_p3 = scmp.lt.s32.totalorder %s2318_s18, %s2314_s3 }
 0x2cb   : > { %p2316_p12 = pnand %p2315_p9, %p2519_p0 }
 0x2cc   : > { %p2321_p1 = por %p2320_p3, %p2319_p11 }
 0x2cd   : > { %p2317_p13 = pneg %p2316_p12 }
 0x2cf   : > { %p2322_p4 = pnand %p2321_p1, %p2317_p13 }
 0x2d1   : > { %2325 = shalt.err (!%p2322_p4)
}
 0x2d2   : > { %s2398_s26 = smov 128   ;;  %s2399_s9 = smov 8  }
 0x2d3   : > { %2054 = dma.vmem_to_hbm [thread:$0]  (%p2519_p0), %s2753_s7, 4096, %s2751_s30, %s1456_s23, %s2398_s26, %s2398_s26, %s2399_s9  }
 0x2d4 PF: > { %s2832_s0 = sld [smem:[#allocation16_spill]]  ;;  %s1486_s27 = sand.u32 1, %s2368_s20  }
 0x2d5   : > { %p2833_p8 = scmp.ne.s32.totalorder %s2819_s28, 0  ;;  %s1487_s13 = scalar_lea.sflag [#allocation6], %s1486_s27 }
 0x2d7   : > { %p2068_p5 = pnand %p1594_p10, %p2833_p8 }
 0x2d9   : > { %p2069_p7 = pneg %p2068_p5 }
 0x2db   : > { %2363 = dma.done.wait (%p2069_p7), %s1487_s13, 4096  }
 0x2dc   : > { %2365 = vsyncadd (%p2069_p7), %s1487_s13, 4294963200  ;;  %s25_s25 = sadd.s32 1, %s2832_s0   ;;  %s2834_s17 = sld [smem:[#allocation15_spill]] }
 0x2dd   : > { %p22_p2 = scmp.ge.s32.totalorder %s25_s25, 4   ;;  %s2835_s22 = sld [smem:[#allocation18_spill]] }
 0x2de   : > { %s2836_s16 = sld [smem:[#allocation17_spill]]  ;;  %s2837_s20 = smov %s2372_s21 }
 0x2df   : > { %s2839_s23 = smov %s2384_s24 }
 0x2e0   :  { %24 = sbr.rel (!%p22_p2) target bundleno = 12 (0xc), region = 106 }
 0x2e2   : > { %s2838_s21 = smov %s2834_s17 }
 0x2e4   : > { %s2840_s24 = smov %s2836_s16 }
 0x2e5   :  { %1492 = vsyncpa [#allocation5], 1 }
 0x2e6   :  { %1494 = vsyncpa [#allocation5 + $0x1], 1 }
 0x2e7   :  { %1495 = vsyncpa [#allocation8], 1 }
 0x2e8   :  { %1497 = vsyncpa [#allocation8 + $0x1], 1 }
 0x2e9   :  { %1498 = vsyncpa [#allocation6], 1 }
 0x2ea   :  { %1500 = vsyncpa [#allocation6 + $0x1], 1 }

</bundles_post_ra>
